<compile_context>
chip_gen: v7x
topology: tpu7x:2x2x1
jax: 0.10.0
libtpu: 0.0.40
codegen_flags: <defaults>
</compile_context>

<pallas_src>
import functools

import jax
import jax.numpy as jnp
from jax.experimental import pallas as pl
from jax.experimental.pallas import tpu as pltpu


LANE = 128  # vreg lane width; feature / hidden / class dims padded to this.


def _round_up(v, m):
    return ((v + m - 1) // m) * m


def _vmem_budget_bytes():
    """Per-generation VMEM budget (v7x has 64 MiB/core vs 128 MiB on v5e/v6e)."""
    default_cap = 64 * 1024 * 1024
    try:
        info = pltpu.get_tpu_info()
        cap = int(getattr(info, "vmem_capacity_bytes", default_cap))
    except Exception:
        cap = default_cap
    return cap * 3 // 4  # leave headroom for compiler scratch / double buffers


# ---------------------------------------------------------------------------
# Fused kernel: MLP + full power iteration, A / H / logits resident in VMEM.
# ---------------------------------------------------------------------------
def _appnp_fused_kernel(x_ref, a_ref, w1_ref, b1_ref, w2_ref, b2_ref, out_ref,
                        *, alpha, n_propagation):
    bf = jnp.bfloat16
    # transform_features: relu(X @ W1 + b1) @ W2 + b2  (bf16 operands, f32 acc)
    h1 = jnp.dot(x_ref[...].astype(bf), w1_ref[...].astype(bf),
                 preferred_element_type=jnp.float32)
    h1 = jnp.maximum(h1 + b1_ref[...], 0.0)
    logits = (jnp.dot(h1.astype(bf), w2_ref[...].astype(bf),
                      preferred_element_type=jnp.float32) + b2_ref[...])

    a = a_ref[...]  # bf16 adjacency, read from HBM exactly once, VMEM-resident
    h = logits
    # n_propagation is small & static -> unrolled straight-line code (full LLO
    # scheduler visibility, no vector loop-carry overhead).
    for _ in range(n_propagation):
        ah = jnp.dot(a, h.astype(bf), preferred_element_type=jnp.float32)
        h = (1.0 - alpha) * ah + alpha * logits
    out_ref[...] = h


# ---------------------------------------------------------------------------
# Streaming fallback (only used when A does not fit the VMEM budget).
# ---------------------------------------------------------------------------
def _mlp_kernel(x_ref, w1_ref, b1_ref, w2_ref, b2_ref, logits_ref):
    bf = jnp.bfloat16
    h1 = jnp.dot(x_ref[...].astype(bf), w1_ref[...].astype(bf),
                 preferred_element_type=jnp.float32)
    h1 = jnp.maximum(h1 + b1_ref[...], 0.0)
    logits_ref[...] = (jnp.dot(h1.astype(bf), w2_ref[...].astype(bf),
                               preferred_element_type=jnp.float32)
                       + b2_ref[...])


def _prop_step_kernel(a_ref, h_ref, logits_ref, out_ref, acc_ref, *, alpha):
    """out = (1-alpha) * (A @ H) + alpha * logits, contraction pipelined."""
    k = pl.program_id(1)

    @pl.when(k == 0)
    def _():
        acc_ref[...] = jnp.zeros_like(acc_ref)

    acc_ref[...] += jnp.dot(a_ref[...], h_ref[...].astype(jnp.bfloat16),
                            preferred_element_type=jnp.float32)

    @pl.when(k == pl.num_programs(1) - 1)
    def _():
        out_ref[...] = ((1.0 - alpha) * acc_ref[...]
                        + alpha * logits_ref[...]).astype(out_ref.dtype)


def _pick_stream_tile(c_pad, budget_bytes):
    # big tiles -> fewer grid steps, longer DMAs; gated by the VMEM budget.
    for t in (2048, 1024, 512, 256, 128):
        need = (2 * t * t * 2          # A tile, bf16, double buffered
                + 2 * t * c_pad * 2    # H tile, bf16, double buffered
                + 2 * t * c_pad * 4    # logits tile, f32, double buffered
                + 2 * t * c_pad * 4    # out tile, f32, double buffered
                + t * c_pad * 4)       # f32 accumulator
        if need <= budget_bytes:
            return t
    return 128


def _appnp_streaming(xp, a_bf16, w1p, b1p, w2p, b2p, *, alpha, n_propagation,
                     budget_bytes):
    n = xp.shape[0]
    f_pad = xp.shape[1]
    h_dim = w1p.shape[1]
    c_pad = w2p.shape[1]

    t = _pick_stream_tile(c_pad, budget_bytes)
    n_pad = _round_up(n, t)
    if n_pad != n:
        # zero rows/cols: padded nodes are isolated and never touch real rows.
        a_bf16 = jnp.zeros((n_pad, n_pad), jnp.bfloat16).at[:n, :n].set(a_bf16)
        xp = jnp.zeros((n_pad, f_pad), xp.dtype).at[:n].set(xp)

    cp = pltpu.CompilerParams(dimension_semantics=("parallel",),
                              vmem_limit_bytes=int(budget_bytes))
    logits = pl.pallas_call(
        _mlp_kernel,
        out_shape=jax.ShapeDtypeStruct((n_pad, c_pad), jnp.float32),
        grid=(n_pad // t,),
        in_specs=[
            pl.BlockSpec((t, f_pad), lambda i: (i, 0)),
            pl.BlockSpec((f_pad, h_dim), lambda i: (0, 0)),
            pl.BlockSpec((1, h_dim), lambda i: (0, 0)),
            pl.BlockSpec((h_dim, c_pad), lambda i: (0, 0)),
            pl.BlockSpec((1, c_pad), lambda i: (0, 0)),
        ],
        out_specs=pl.BlockSpec((t, c_pad), lambda i: (i, 0)),
        compiler_params=cp,
    )(xp, w1p, b1p, w2p, b2p)

    def make_step(out_dtype):
        return pl.pallas_call(
            functools.partial(_prop_step_kernel, alpha=alpha),
            out_shape=jax.ShapeDtypeStruct((n_pad, c_pad), out_dtype),
            grid=(n_pad // t, n_pad // t),
            in_specs=[
                pl.BlockSpec((t, t), lambda i, k: (i, k)),       # A tile (bf16)
                pl.BlockSpec((t, c_pad), lambda i, k: (k, 0)),   # H contraction
                pl.BlockSpec((t, c_pad), lambda i, k: (i, 0)),   # logits
            ],
            out_specs=pl.BlockSpec((t, c_pad), lambda i, k: (i, 0)),
            scratch_shapes=[pltpu.VMEM((t, c_pad), jnp.float32)],
            compiler_params=pltpu.CompilerParams(
                dimension_semantics=("parallel", "arbitrary"),
                vmem_limit_bytes=int(budget_bytes)),
        )

    step_mid = make_step(jnp.bfloat16)   # bf16 inter-step H: halves HBM traffic
    step_last = make_step(jnp.float32)
    h = logits
    for s in range(n_propagation):
        h = (step_last if s == n_propagation - 1 else step_mid)(a_bf16, h, logits)
    return h[:n].astype(jnp.float32)


# ---------------------------------------------------------------------------
# Wrapper
# ---------------------------------------------------------------------------
def appnp_forward(x, a, w1, b1, w2, b2, *, alpha=0.1, n_propagation=5):
    """x: (N, F) f32, a: (N, N) f32 dense 0/1 adjacency (raw, with self-loops).

    Returns propagated logits of shape (N, C) f32.
    """
    n, f = x.shape
    hdim = w1.shape[1]
    c = w2.shape[1]

    # Zero-pad feature / hidden / class dims to lane width (exact: pads are 0).
    f_pad = _round_up(f, LANE)
    h_pad = _round_up(hdim, LANE)
    c_pad = _round_up(c, LANE)

    xp = x if f_pad == f else jnp.zeros((n, f_pad), jnp.float32).at[:, :f].set(x)
    w1p = jnp.zeros((f_pad, h_pad), jnp.float32).at[:f, :hdim].set(w1)
    b1p = jnp.zeros((1, h_pad), jnp.float32).at[:, :hdim].set(b1.reshape(1, -1))
    w2p = jnp.zeros((h_pad, c_pad), jnp.float32).at[:hdim, :c].set(w2)
    b2p = jnp.zeros((1, c_pad), jnp.float32).at[:, :c].set(b2.reshape(1, -1))

    # A entries are exactly 0/1 -> bf16 cast is lossless; halves A's traffic.
    a_bf16 = a.astype(jnp.bfloat16)

    budget = _vmem_budget_bytes()
    fused_bytes = (
        2 * n * n                                             # A (bf16) resident
        + 4 * n * f_pad                                       # X
        + 4 * (f_pad * h_pad + h_pad * c_pad + h_pad + c_pad) # weights / biases
        + 4 * n * (h_pad + 3 * c_pad)                         # h1/logits/h/out
    )

    if fused_bytes <= budget:
        out = pl.pallas_call(
            functools.partial(_appnp_fused_kernel, alpha=alpha,
                              n_propagation=n_propagation),
            out_shape=jax.ShapeDtypeStruct((n, c_pad), jnp.float32),
            compiler_params=pltpu.CompilerParams(
                vmem_limit_bytes=int(budget)),
        )(xp, a_bf16, w1p, b1p, w2p, b2p)
    else:
        # TODO(synk): megacore split (pl.core_map + core_barrier) of the
        # streaming path on v7x; currently relies on ("parallel", ...) grid.
        out = _appnp_streaming(xp, a_bf16, w1p, b1p, w2p, b2p, alpha=alpha,
                               n_propagation=n_propagation, budget_bytes=budget)
    return out[:, :c]


if __name__ == "__main__":
    # Small problem consistent with the module defaults:
    #   N nodes = 128, n_features = 32, hidden_dimensions = [64], n_classes = 8
    N, F, H, C = 128, 32, 64, 8
    alpha, n_propagation = 0.1, 5

    key = jax.random.PRNGKey(0)
    kx, ka, kw1, kb1, kw2, kb2 = jax.random.split(key, 6)

    x = jax.random.normal(kx, (N, F), dtype=jnp.float32)

    # Adjacency with self-loops (dense 0/1 float32; the torch module takes
    # sparse COO -- densified here).
    adj_rand = (jax.random.uniform(ka, (N, N)) < 0.05).astype(jnp.float32)
    adj = jnp.maximum(adj_rand, adj_rand.T)                  # symmetric
    adj = jnp.maximum(adj, jnp.eye(N, dtype=jnp.float32))    # add self-loops

    # Deterministic nn.Linear-style init: uniform(-1/sqrt(in), 1/sqrt(in)).
    def init_linear(kw, kb, fan_in, fan_out):
        bound = 1.0 / jnp.sqrt(jnp.float32(fan_in))
        w = jax.random.uniform(kw, (fan_in, fan_out), jnp.float32, -bound, bound)
        b = jax.random.uniform(kb, (1, fan_out), jnp.float32, -bound, bound)
        return w, b

    w1, b1 = init_linear(kw1, kb1, F, H)
    w2, b2 = init_linear(kw2, kb2, H, C)

    fwd = jax.jit(functools.partial(appnp_forward, alpha=alpha,
                                    n_propagation=n_propagation))
    out = jax.block_until_ready(fwd(x, adj, w1, b1, w2, b2))

    # Pure-JAX reference mirroring the kernel math exactly: bf16 matmul
    # operands (exact products; A's 0/1 cast is lossless), f32 accumulation,
    # f32 elementwise work.
    bf = jnp.bfloat16
    h1_ref = jnp.maximum(
        jnp.dot(x.astype(bf), w1.astype(bf),
                preferred_element_type=jnp.float32) + b1, 0.0)
    logits_ref = jnp.dot(h1_ref.astype(bf), w2.astype(bf),
                         preferred_element_type=jnp.float32) + b2
    a_bf = adj.astype(bf)
    h_ref = logits_ref
    for _ in range(n_propagation):
        ah = jnp.dot(a_bf, h_ref.astype(bf), preferred_element_type=jnp.float32)
        h_ref = (1.0 - alpha) * ah + alpha * logits_ref

    assert out.shape == (N, C)
    scale = jnp.max(jnp.abs(h_ref))
    assert jnp.allclose(out, h_ref, rtol=1e-3, atol=1e-3 * scale), (
        float(jnp.max(jnp.abs(out - h_ref))), float(scale))

    print("KERNEL_OK")
</pallas_src>

<mosaic_0001>
module attributes {stable_mosaic.version = 11 : i64} {
  func.func @_appnp_fused_kernel(%arg0: memref<128x128xf32, #tpu.memory_space<vmem>>, %arg1: memref<128x128xbf16, #tpu.memory_space<vmem>>, %arg2: memref<128x128xf32, #tpu.memory_space<vmem>>, %arg3: memref<1x128xf32, #tpu.memory_space<vmem>>, %arg4: memref<128x128xf32, #tpu.memory_space<vmem>>, %arg5: memref<1x128xf32, #tpu.memory_space<vmem>>, %arg6: memref<128x128xf32, #tpu.memory_space<vmem>>) attributes {dimension_semantics = [], scalar_prefetch = 0 : i64, scratch_operands = 0 : i64, tpu.core_type = #tpu.core_type<tc>} {
    %c0 = arith.constant 0 : index
    %c0_0 = arith.constant 0 : index
    %0 = vector.load %arg0[%c0, %c0_0] : memref<128x128xf32, #tpu.memory_space<vmem>>, vector<128x128xf32>
    %1 = arith.truncf %0 : vector<128x128xf32> to vector<128x128xbf16>
    %c0_1 = arith.constant 0 : index
    %c0_2 = arith.constant 0 : index
    %2 = vector.load %arg2[%c0_1, %c0_2] : memref<128x128xf32, #tpu.memory_space<vmem>>, vector<128x128xf32>
    %3 = arith.truncf %2 : vector<128x128xf32> to vector<128x128xbf16>
    %cst = arith.constant dense<0.000000e+00> : vector<128x128xf32>
    %4 = tpu.matmul %1, %3, %cst {dimension_numbers = #tpu.dot_dimension_numbers<[1], [0], [0], [1], [0, 0, 1, 1], [], []>} : vector<128x128xbf16>, vector<128x128xbf16>, vector<128x128xf32> -> vector<128x128xf32>
    %c0_3 = arith.constant 0 : index
    %c0_4 = arith.constant 0 : index
    %5 = vector.load %arg3[%c0_3, %c0_4] : memref<1x128xf32, #tpu.memory_space<vmem>>, vector<1x128xf32>
    %6 = vector.broadcast %5 : vector<1x128xf32> to vector<128x128xf32>
    %7 = arith.addf %4, %6 : vector<128x128xf32>
    %cst_5 = arith.constant 0.000000e+00 : f32
    %8 = vector.broadcast %cst_5 : f32 to vector<128x128xf32>
    %9 = arith.maximumf %7, %8 : vector<128x128xf32>
    %10 = arith.truncf %9 : vector<128x128xf32> to vector<128x128xbf16>
    %c0_6 = arith.constant 0 : index
    %c0_7 = arith.constant 0 : index
    %11 = vector.load %arg4[%c0_6, %c0_7] : memref<128x128xf32, #tpu.memory_space<vmem>>, vector<128x128xf32>
    %12 = arith.truncf %11 : vector<128x128xf32> to vector<128x128xbf16>
    %cst_8 = arith.constant dense<0.000000e+00> : vector<128x128xf32>
    %13 = tpu.matmul %10, %12, %cst_8 {dimension_numbers = #tpu.dot_dimension_numbers<[1], [0], [0], [1], [0, 0, 1, 1], [], []>} : vector<128x128xbf16>, vector<128x128xbf16>, vector<128x128xf32> -> vector<128x128xf32>
    %c0_9 = arith.constant 0 : index
    %c0_10 = arith.constant 0 : index
    %14 = vector.load %arg5[%c0_9, %c0_10] : memref<1x128xf32, #tpu.memory_space<vmem>>, vector<1x128xf32>
    %15 = vector.broadcast %14 : vector<1x128xf32> to vector<128x128xf32>
    %16 = arith.addf %13, %15 : vector<128x128xf32>
    %c0_11 = arith.constant 0 : index
    %c0_12 = arith.constant 0 : index
    %17 = vector.load %arg1[%c0_11, %c0_12] : memref<128x128xbf16, #tpu.memory_space<vmem>>, vector<128x128xbf16>
    %18 = arith.truncf %16 : vector<128x128xf32> to vector<128x128xbf16>
    %cst_13 = arith.constant dense<0.000000e+00> : vector<128x128xf32>
    %19 = tpu.matmul %17, %18, %cst_13 {dimension_numbers = #tpu.dot_dimension_numbers<[1], [0], [0], [1], [0, 0, 1, 1], [], []>} : vector<128x128xbf16>, vector<128x128xbf16>, vector<128x128xf32> -> vector<128x128xf32>
    %cst_14 = arith.constant 0.899999976 : f32
    %20 = vector.broadcast %cst_14 : f32 to vector<128x128xf32>
    %21 = arith.mulf %20, %19 : vector<128x128xf32>
    %cst_15 = arith.constant 1.000000e-01 : f32
    %22 = vector.broadcast %cst_15 : f32 to vector<128x128xf32>
    %23 = arith.mulf %22, %16 : vector<128x128xf32>
    %24 = arith.addf %21, %23 : vector<128x128xf32>
    %25 = arith.truncf %24 : vector<128x128xf32> to vector<128x128xbf16>
    %cst_16 = arith.constant dense<0.000000e+00> : vector<128x128xf32>
    %26 = tpu.matmul %17, %25, %cst_16 {dimension_numbers = #tpu.dot_dimension_numbers<[1], [0], [0], [1], [0, 0, 1, 1], [], []>} : vector<128x128xbf16>, vector<128x128xbf16>, vector<128x128xf32> -> vector<128x128xf32>
    %cst_17 = arith.constant 0.899999976 : f32
    %27 = vector.broadcast %cst_17 : f32 to vector<128x128xf32>
    %28 = arith.mulf %27, %26 : vector<128x128xf32>
    %cst_18 = arith.constant 1.000000e-01 : f32
    %29 = vector.broadcast %cst_18 : f32 to vector<128x128xf32>
    %30 = arith.mulf %29, %16 : vector<128x128xf32>
    %31 = arith.addf %28, %30 : vector<128x128xf32>
    %32 = arith.truncf %31 : vector<128x128xf32> to vector<128x128xbf16>
    %cst_19 = arith.constant dense<0.000000e+00> : vector<128x128xf32>
    %33 = tpu.matmul %17, %32, %cst_19 {dimension_numbers = #tpu.dot_dimension_numbers<[1], [0], [0], [1], [0, 0, 1, 1], [], []>} : vector<128x128xbf16>, vector<128x128xbf16>, vector<128x128xf32> -> vector<128x128xf32>
    %cst_20 = arith.constant 0.899999976 : f32
    %34 = vector.broadcast %cst_20 : f32 to vector<128x128xf32>
    %35 = arith.mulf %34, %33 : vector<128x128xf32>
    %cst_21 = arith.constant 1.000000e-01 : f32
    %36 = vector.broadcast %cst_21 : f32 to vector<128x128xf32>
    %37 = arith.mulf %36, %16 : vector<128x128xf32>
    %38 = arith.addf %35, %37 : vector<128x128xf32>
    %39 = arith.truncf %38 : vector<128x128xf32> to vector<128x128xbf16>
    %cst_22 = arith.constant dense<0.000000e+00> : vector<128x128xf32>
    %40 = tpu.matmul %17, %39, %cst_22 {dimension_numbers = #tpu.dot_dimension_numbers<[1], [0], [0], [1], [0, 0, 1, 1], [], []>} : vector<128x128xbf16>, vector<128x128xbf16>, vector<128x128xf32> -> vector<128x128xf32>
    %cst_23 = arith.constant 0.899999976 : f32
    %41 = vector.broadcast %cst_23 : f32 to vector<128x128xf32>
    %42 = arith.mulf %41, %40 : vector<128x128xf32>
    %cst_24 = arith.constant 1.000000e-01 : f32
    %43 = vector.broadcast %cst_24 : f32 to vector<128x128xf32>
    %44 = arith.mulf %43, %16 : vector<128x128xf32>
    %45 = arith.addf %42, %44 : vector<128x128xf32>
    %46 = arith.truncf %45 : vector<128x128xf32> to vector<128x128xbf16>
    %cst_25 = arith.constant dense<0.000000e+00> : vector<128x128xf32>
    %47 = tpu.matmul %17, %46, %cst_25 {dimension_numbers = #tpu.dot_dimension_numbers<[1], [0], [0], [1], [0, 0, 1, 1], [], []>} : vector<128x128xbf16>, vector<128x128xbf16>, vector<128x128xf32> -> vector<128x128xf32>
    %cst_26 = arith.constant 0.899999976 : f32
    %48 = vector.broadcast %cst_26 : f32 to vector<128x128xf32>
    %49 = arith.mulf %48, %47 : vector<128x128xf32>
    %cst_27 = arith.constant 1.000000e-01 : f32
    %50 = vector.broadcast %cst_27 : f32 to vector<128x128xf32>
    %51 = arith.mulf %50, %16 : vector<128x128xf32>
    %52 = arith.addf %49, %51 : vector<128x128xf32>
    %c0_28 = arith.constant 0 : index
    %c0_29 = arith.constant 0 : index
    %53 = vector.load %arg6[%c0_28, %c0_29] : memref<128x128xf32, #tpu.memory_space<vmem>>, vector<128x128xf32>
    tpu.vector_store %arg6[%c0_28, %c0_29], %52 {strides = array<i32>} : memref<128x128xf32, #tpu.memory_space<vmem>>, vector<128x128xf32>,
    return
  }
}

</mosaic_0001>

<bundles_post_ra>
// kernel: appnp_forward.1
= control target key start
LH: loop header
LB: loop body
LE: loop exit
PB: predicated region body
PF: predicated region fallthrough
CT: control target
= control target key end

     0   :  { %s1972_s2 = inlined_call_operand.vmem [shape: f32[128,128], index: 2, kind: input, shape index: {}]   ;;  %s1973_s0 = inlined_call_operand.vmem [shape: f32[128,128], index: 0, kind: input, shape index: {}]   ;;  %s1974_s4 = inlined_call_operand.vmem [shape: f32[128,128], index: 4, kind: input, shape index: {}]   ;;  %s1975_s3 = inlined_call_operand.vmem [shape: f32[1,128], index: 3, kind: input, shape index: {}]   ;;  %s1976_s1 = inlined_call_operand.vmem [shape: bf16[128,128], index: 1, kind: input, shape index: {}]   ;;  %s1977_s5 = inlined_call_operand.vmem [shape: f32[1,128], index: 5, kind: input, shape index: {}]   ;;  %s1978_s6 = inlined_call_operand.vmem [shape: f32[128,128], index: 6, kind: output, shape index: {}]  }
   0x1   :  { %v48_v0 = vld [vmem:[%s1972_s2] sm:$0xff]  ;;  %v49_v1 = vld [vmem:[%s1972_s2 + $0x8] sm:$0xff]  ;;  %v50_v2 = vld [vmem:[%s1972_s2 + $0x10] sm:$0xff] }
   0x2   :  { %v64_v3 = vpack.c.bf16 %v49_v1, %v48_v0  ;;  %v51_v4 = vld [vmem:[%s1972_s2 + $0x18] sm:$0xff]  ;;  %v52_v6 = vld [vmem:[%s1972_s2 + $0x20] sm:$0xff]  ;;  %v53_v7 = vld [vmem:[%s1972_s2 + $0x28] sm:$0xff] }
   0x3   :  { %v65_v5 = vpack.c.bf16 %v51_v4, %v50_v2  ;;  %v66_v8 = vpack.c.bf16 %v53_v7, %v52_v6  ;;  %v24_v9 = vld [vmem:[%s1973_s0] sm:$0xff]  ;;  %v25_v10 = vld [vmem:[%s1973_s0 + $0x8] sm:$0xff]  ;;  %v54_v11 = vld [vmem:[%s1972_s2 + $0x30] sm:$0xff] }
   0x4   :  { %1235 = vmatprep.subr.bf16.mxu0 %v64_v3  ;;  %v55_v12 = vld [vmem:[%s1972_s2 + $0x38] sm:$0xff]  ;;  %v40_v13 = vpack.c.bf16 %v25_v10, %v24_v9  ;;  %v56_v15 = vld [vmem:[%s1972_s2 + $0x40] sm:$0xff]  ;;  %v57_v16 = vld [vmem:[%s1972_s2 + $0x48] sm:$0xff] }
   0x5   :  { %1236 = vmatpush3.bf16.msra.mxu0 %v64_v3  ;;  %v67_v14 = vpack.c.bf16 %v55_v12, %v54_v11  ;;  %v200_v17 = vld [vmem:[%s1974_s4] sm:$0xff]  ;;  %v201_v18 = vld [vmem:[%s1974_s4 + $0x8] sm:$0xff]  ;;  %v202_v19 = vld [vmem:[%s1974_s4 + $0x10] sm:$0xff]  ;;  %v68_v23 = vpack.c.bf16 %v57_v16, %v56_v15 }
   0x6   :  { %1237 = vmatprep.subr.bf16.mxu0 %v65_v5  ;;  %1251 = vmatprep.mubr.bf16.mxu0 %v40_v13  ;;  %v203_v20 = vld [vmem:[%s1974_s4 + $0x18] sm:$0xff]  ;;  %v216_v21 = vpack.c.bf16 %v201_v18, %v200_v17  ;;  %v204_v24 = vld [vmem:[%s1974_s4 + $0x20] sm:$0xff]  ;;  %v205_v25 = vld [vmem:[%s1974_s4 + $0x28] sm:$0xff] }
   0x7   :  { %v217_v22 = vpack.c.bf16 %v203_v20, %v202_v19  ;;  %v58_v26 = vld [vmem:[%s1972_s2 + $0x50] sm:$0xff]  ;;  %v59_v27 = vld [vmem:[%s1972_s2 + $0x58] sm:$0xff]  ;;  %v218_v28 = vpack.c.bf16 %v205_v25, %v204_v24  ;;  %v60_v32 = vld [vmem:[%s1972_s2 + $0x60] sm:$0xff] }
   0x8   :  { %1267 = vmatprep.subr.bf16.mxu1 %v216_v21  ;;  %v69_v29 = vpack.c.bf16 %v59_v27, %v58_v26  ;;  %v206_v30 = vld [vmem:[%s1974_s4 + $0x30] sm:$0xff]  ;;  %v207_v31 = vld [vmem:[%s1974_s4 + $0x38] sm:$0xff]  ;;  %v61_v33 = vld [vmem:[%s1972_s2 + $0x68] sm:$0xff] }
   0x9   :  { %1238 = vmatpush3.bf16.msra.mxu0 %v65_v5  ;;  %1268 = vmatpush3.bf16.msra.mxu1 %v216_v21  ;;  %v219_v34 = vpack.c.bf16 %v207_v31, %v206_v30  ;;  %v70_v35 = vpack.c.bf16 %v61_v33, %v60_v32  ;;  %v208_v36 = vld [vmem:[%s1974_s4 + $0x40] sm:$0xff]  ;;  %v209_v37 = vld [vmem:[%s1974_s4 + $0x48] sm:$0xff]  ;;  %v62_v38 = vld [vmem:[%s1972_s2 + $0x70] sm:$0xff] }
   0xa   :  { %1239 = vmatprep.subr.bf16.mxu0 %v66_v8  ;;  %1269 = vmatprep.subr.bf16.mxu1 %v217_v22  ;;  %v63_v39 = vld [vmem:[%s1972_s2 + $0x78] sm:$0xff]  ;;  %v220_v40 = vpack.c.bf16 %v209_v37, %v208_v36  ;;  %v210_v42 = vld [vmem:[%s1974_s4 + $0x50] sm:$0xff]  ;;  %v28_v47 = vld [vmem:[%s1973_s0 + $0x20] sm:$0xff] }
   0xb   :  { %v71_v41 = vpack.c.bf16 %v63_v39, %v62_v38  ;;  %v211_v43 = vld [vmem:[%s1974_s4 + $0x58] sm:$0xff]  ;;  %v26_v44 = vld [vmem:[%s1973_s0 + $0x10] sm:$0xff]  ;;  %v29_v48 = vld [vmem:[%s1973_s0 + $0x28] sm:$0xff] }
   0xc   :  { %v27_v45 = vld [vmem:[%s1973_s0 + $0x18] sm:$0xff]  ;;  %v221_v46 = vpack.c.bf16 %v211_v43, %v210_v42  ;;  %v42_v50 = vpack.c.bf16 %v29_v48, %v28_v47  ;;  %v30_v51 = vld [vmem:[%s1973_s0 + $0x30] sm:$0xff]  ;;  %v32_v53 = vld [vmem:[%s1973_s0 + $0x40] sm:$0xff] }
   0xd   :  { %1240 = vmatpush3.bf16.msra.mxu0 %v66_v8  ;;  %1270 = vmatpush3.bf16.msra.mxu1 %v217_v22  ;;  %v41_v49 = vpack.c.bf16 %v27_v45, %v26_v44  ;;  %v31_v52 = vld [vmem:[%s1973_s0 + $0x38] sm:$0xff]  ;;  %v33_v54 = vld [vmem:[%s1973_s0 + $0x48] sm:$0xff]  ;;  %v34_v57 = vld [vmem:[%s1973_s0 + $0x50] sm:$0xff] }
   0xe   :  { %1241 = vmatprep.subr.bf16.mxu0 %v67_v14  ;;  %1271 = vmatprep.subr.bf16.mxu1 %v218_v28  ;;  %v43_v55 = vpack.c.bf16 %v31_v52, %v30_v51  ;;  %v44_v56 = vpack.c.bf16 %v33_v54, %v32_v53  ;;  %v35_v58 = vld [vmem:[%s1973_s0 + $0x58] sm:$0xff]  ;;  %v36_v59 = vld [vmem:[%s1973_s0 + $0x60] sm:$0xff]  ;;  %v37_v60 = vld [vmem:[%s1973_s0 + $0x68] sm:$0xff] }
   0xf   :  { %v45_v61 = vpack.c.bf16 %v35_v58, %v34_v57  ;;  %v46_v62 = vpack.c.bf16 %v37_v60, %v36_v59  ;;  %v38_v63 = vld [vmem:[%s1973_s0 + $0x70] sm:$0xff]  ;;  %v39_v0 = vld [vmem:[%s1973_s0 + $0x78] sm:$0xff]  ;;  %v212_v2 = vld [vmem:[%s1974_s4 + $0x60] sm:$0xff] }
  0x10   :  { %v47_v1 = vpack.c.bf16 %v39_v0, %v38_v63  ;;  %v213_v3 = vld [vmem:[%s1974_s4 + $0x68] sm:$0xff]  ;;  %v214_v5 = vld [vmem:[%s1974_s4 + $0x70] sm:$0xff]  ;;  %v215_v6 = vld [vmem:[%s1974_s4 + $0x78] sm:$0xff] }
  0x11   :  { %1242 = vmatpush3.bf16.msra.mxu0 %v67_v14  ;;  %1272 = vmatpush3.bf16.msra.mxu1 %v218_v28  ;;  %v222_v4 = vpack.c.bf16 %v213_v3, %v212_v2  ;;  %v223_v7 = vpack.c.bf16 %v215_v6, %v214_v5  ;;  %v1113_v8 = vld [vmem:[%s1975_s3] ss:$0 sm:$0xff] }
  0x12   :  { %1243 = vmatprep.subr.bf16.mxu0 %v68_v23  ;;  %1273 = vmatprep.subr.bf16.mxu1 %v219_v34  ;;  %v1114_v3 = vld [vmem:[%s1977_s5] ss:$0 sm:$0xff] }
  0x15   :  { %1244 = vmatpush3.bf16.msra.mxu0 %v68_v23  ;;  %1274 = vmatpush3.bf16.msra.mxu1 %v219_v34 }
  0x16   :  { %1245 = vmatprep.subr.bf16.mxu0 %v69_v29  ;;  %1275 = vmatprep.subr.bf16.mxu1 %v220_v40 }
  0x19   :  { %1246 = vmatpush3.bf16.msra.mxu0 %v69_v29  ;;  %1276 = vmatpush3.bf16.msra.mxu1 %v220_v40 }
  0x1a   :  { %1247 = vmatprep.subr.bf16.mxu0 %v70_v35  ;;  %1277 = vmatprep.subr.bf16.mxu1 %v221_v46 }
  0x1d   :  { %1248 = vmatpush3.bf16.msra.mxu0 %v70_v35  ;;  %1278 = vmatpush3.bf16.msra.mxu1 %v221_v46 }
  0x1e   :  { %1249 = vmatprep.subr.bf16.mxu0 %v71_v41  ;;  %1279 = vmatprep.subr.bf16.mxu1 %v222_v4 }
  0x21   :  { %1250 = vmatpush3.bf16.msra.mxu0 %v71_v41  ;;  %1280 = vmatpush3.bf16.msra.mxu1 %v222_v4 }
  0x22   :  { %1281 = vmatprep.subr.bf16.mxu1 %v223_v7 }
  0x24   :  { %1252 = vmatmul.mubr.bf16.vlgmr.msra.gmra.mrb[0].mxu0 %v41_v49 }
  0x25   :  { %1255 = vmatprep.mubr.bf16.mxu0 %v42_v50  ;;  %1282 = vmatpush3.bf16.msra.mxu1 %v223_v7 }
  0x2c   :  { %1256 = vmatmul.mubr.bf16.gmra.mrb[4].mxu0 %v43_v55 }
  0x2d   :  { %1259 = vmatprep.mubr.bf16.mxu0 %v44_v56 }
  0x34   :  { %1260 = vmatmul.mubr.bf16.gmra.mrb[8].mxu0 %v45_v61 }
  0x35   :  { %1263 = vmatprep.mubr.bf16.mxu0 %v46_v62 }
  0x3c   :  { %1264 = vmatmul.mubr.bf16.gmra.mrb[12].mxu0 %v47_v1  ;;  %v1668_v1 = vld [vmem:[%s1976_s1] sm:$0xff]  }
  0x3d   :  { %1315 = vmatprep.mubr.bf16.mxu0 %v1668_v1 }
  0xf7   :  { %v1253_v9 = vpop.f32.mrb[0].mxu0 }
  0xf8   :  { %v122_v10 = vadd.f32 %v1253_v9, %v1113_v8  ;;  %v113_v11 = vpop.f32.mrb[1].mxu0 }
  0xf9   :  { %v114_v12 = vadd.f32 %v1113_v8, %v113_v11  ;;  %v1254_v13 = vpop.f32.mrb[2].mxu0 }
  0xfa   :  { %v125_v14 = vadd.f32 %v1254_v13, %v1113_v8  ;;  %v116_v15 = vpop.f32.mrb[3].mxu0  ;;  %v178_v17 = vmax.f32 %v122_v10, 0.0 }
  0xfb   :  { %v117_v16 = vadd.f32 %v1113_v8, %v116_v15  ;;  %v176_v19 = vmax.f32 %v114_v12, 0.0 }
  0xfc   :  { %v179_v18 = vmax.f32 %v125_v14, 0.0 }
  0xfd   :  { %v177_v20 = vmax.f32 %v117_v16, 0.0 }
  0xfe   :  { %v193_v21 = vpack.c.bf16 %v179_v18, %v178_v17 }
  0xff   :  { %v1257_v22 = vpop.f32.mrb[4].mxu0  ;;  %v192_v23 = vpack.c.bf16 %v177_v20, %v176_v19 }
 0x100   :  { %v138_v24 = vadd.f32 %v1257_v22, %v1113_v8  ;;  %v129_v25 = vpop.f32.mrb[5].mxu0 }
 0x101   :  { %v130_v26 = vadd.f32 %v1113_v8, %v129_v25  ;;  %v1258_v27 = vpop.f32.mrb[6].mxu0  ;;  %1283 = vmatprep.mubr.bf16.mxu1 %v192_v23 }
 0x102   :  { %v141_v28 = vadd.f32 %v1258_v27, %v1113_v8  ;;  %v132_v29 = vpop.f32.mrb[7].mxu0  ;;  %1284 = vmatmul.mubr.bf16.vlgmr.msra.gmra.mrb[0].mxu1 %v193_v21  ;;  %v182_v31 = vmax.f32 %v138_v24, 0.0 }
 0x103   :  { %v133_v30 = vadd.f32 %v1113_v8, %v132_v29  ;;  %v180_v33 = vmax.f32 %v130_v26, 0.0 }
 0x104   :  { %v183_v32 = vmax.f32 %v141_v28, 0.0 }
 0x105   :  { %v181_v34 = vmax.f32 %v133_v30, 0.0 }
 0x106   :  { %v195_v35 = vpack.c.bf16 %v183_v32, %v182_v31 }
 0x107   :  { %v194_v36 = vpack.c.bf16 %v181_v34, %v180_v33  ;;  %v1261_v37 = vpop.f32.mrb[8].mxu0 }
 0x108   :  { %v154_v38 = vadd.f32 %v1261_v37, %v1113_v8  ;;  %v145_v39 = vpop.f32.mrb[9].mxu0 }
 0x109   :  { %v146_v40 = vadd.f32 %v1113_v8, %v145_v39  ;;  %v1262_v41 = vpop.f32.mrb[10].mxu0  ;;  %1287 = vmatprep.mubr.bf16.mxu1 %v194_v36 }
 0x10a   :  { %v157_v42 = vadd.f32 %v1262_v41, %v1113_v8  ;;  %v148_v43 = vpop.f32.mrb[11].mxu0  ;;  %1288 = vmatmul.mubr.bf16.gmra.mrb[4].mxu1 %v195_v35  ;;  %v186_v45 = vmax.f32 %v154_v38, 0.0 }
 0x10b   :  { %v149_v44 = vadd.f32 %v1113_v8, %v148_v43  ;;  %v184_v47 = vmax.f32 %v146_v40, 0.0  ;;  %v1726_v43 = vld [vmem:[%s1976_s1 + $0x8] sm:$0xff]  }
 0x10c   :  { %v187_v46 = vmax.f32 %v157_v42, 0.0 }
 0x10d   :  { %v185_v48 = vmax.f32 %v149_v44, 0.0  ;;  %v1731_v44 = vld [vmem:[%s1976_s1 + $0x10] sm:$0xff]  }
 0x10e   :  { %v197_v49 = vpack.c.bf16 %v187_v46, %v186_v45  ;;  %v1738_v45 = vld [vmem:[%s1976_s1 + $0x18] sm:$0xff]   ;;  %v1743_v46 = vld [vmem:[%s1976_s1 + $0x20] sm:$0xff]  }
 0x10f   :  { %v196_v50 = vpack.c.bf16 %v185_v48, %v184_v47  ;;  %v1265_v51 = vpop.f32.mrb[12].mxu0  ;;  %v1750_v47 = vld [vmem:[%s1976_s1 + $0x28] sm:$0xff]   ;;  %v1755_v48 = vld [vmem:[%s1976_s1 + $0x30] sm:$0xff]  }
 0x110   :  { %v170_v52 = vadd.f32 %v1265_v51, %v1113_v8  ;;  %v161_v53 = vpop.f32.mrb[13].mxu0 }
 0x111   :  { %v162_v54 = vadd.f32 %v1113_v8, %v161_v53  ;;  %v1266_v55 = vpop.f32.mrb[14].mxu0  ;;  %1291 = vmatprep.mubr.bf16.mxu1 %v196_v50 }
 0x112   :  { %v173_v56 = vadd.f32 %v1266_v55, %v1113_v8  ;;  %v164_v57 = vpop.f32.mrb[15].mxu0  ;;  %1292 = vmatmul.mubr.bf16.gmra.mrb[8].mxu1 %v197_v49  ;;  %v190_v59 = vmax.f32 %v170_v52, 0.0  ;;  %v1762_v49 = vld [vmem:[%s1976_s1 + $0x38] sm:$0xff]  }
 0x113   :  { %v165_v58 = vadd.f32 %v1113_v8, %v164_v57  ;;  %v188_v61 = vmax.f32 %v162_v54, 0.0 }
 0x114   :  { %v191_v60 = vmax.f32 %v173_v56, 0.0 }
 0x115   :  { %v189_v62 = vmax.f32 %v165_v58, 0.0 }
 0x116   :  { %v199_v63 = vpack.c.bf16 %v191_v60, %v190_v59 }
 0x117   :  { %v198_v0 = vpack.c.bf16 %v189_v62, %v188_v61 }
 0x119   :  { %1295 = vmatprep.mubr.bf16.mxu1 %v198_v0 }
 0x11a   :  { %1296 = vmatmul.mubr.bf16.gmra.mrb[12].mxu1 %v199_v63 }
 0x11b   :  { %1347 = vmatprep.mubr.bf16.mxu1 %v1668_v1 }
 0x1d5   :  { %v1285_v2 = vpop.f32.mrb[0].mxu1 }
 0x1d6   :  { %v265_v4 = vpop.f32.mrb[1].mxu1  ;;  %v1675_v6 = vadd.f32 %v1285_v2, %v1114_v3 }
 0x1d7   :  { %v1286_v5 = vpop.f32.mrb[2].mxu1  ;;  %v1679_v9 = vadd.f32 %v1114_v3, %v265_v4 }
 0x1d8   :  { %v1677_v7 = vadd.f32 %v1286_v5, %v1114_v3  ;;  %v268_v8 = vpop.f32.mrb[3].mxu1  ;;  %v1767_v53 = vmul.f32 0.1, %v1675_v6 }
 0x1d9   :  { %v1681_v10 = vadd.f32 %v1114_v3, %v268_v8  ;;  %v1773_v59 = vmul.f32 0.1, %v1679_v9 }
 0x1da   :  { %v345_v11 = vpack.c.bf16 %v1677_v7, %v1675_v6  ;;  %v1770_v56 = vmul.f32 0.1, %v1677_v7 }
 0x1db   :  { %v344_v12 = vpack.c.bf16 %v1681_v10, %v1679_v9  ;;  %v1776_v60 = vmul.f32 0.1, %v1681_v10 }
 0x1dd   :  { %v1289_v13 = vpop.f32.mrb[4].mxu1  ;;  %1299 = vmatprep.subr.bf16.mxu0 %v344_v12 }
 0x1de   :  { %v281_v14 = vpop.f32.mrb[5].mxu1  ;;  %1300 = vmatpush3.bf16.msra.mxu0 %v344_v12  ;;  %v1687_v16 = vadd.f32 %v1289_v13, %v1114_v3 }
 0x1df   :  { %v1290_v15 = vpop.f32.mrb[6].mxu1  ;;  %1301 = vmatprep.subr.bf16.mxu0 %v345_v11  ;;  %v1691_v19 = vadd.f32 %v1114_v3, %v281_v14 }
 0x1e0   :  { %v1689_v17 = vadd.f32 %v1290_v15, %v1114_v3  ;;  %v284_v18 = vpop.f32.mrb[7].mxu1  ;;  %v1783_v8 = vmul.f32 0.1, %v1687_v16 }
 0x1e1   :  { %v1693_v20 = vadd.f32 %v1114_v3, %v284_v18  ;;  %v1789_v14 = vmul.f32 0.1, %v1691_v19 }
 0x1e2   :  { %v347_v21 = vpack.c.bf16 %v1689_v17, %v1687_v16  ;;  %1302 = vmatpush3.bf16.msra.mxu0 %v345_v11  ;;  %v1786_v11 = vmul.f32 0.1, %v1689_v17 }
 0x1e3   :  { %v346_v22 = vpack.c.bf16 %v1693_v20, %v1691_v19  ;;  %v1792_v15 = vmul.f32 0.1, %v1693_v20 }
 0x1e5   :  { %v1293_v23 = vpop.f32.mrb[8].mxu1  ;;  %1303 = vmatprep.subr.bf16.mxu0 %v346_v22 }
 0x1e6   :  { %v297_v24 = vpop.f32.mrb[9].mxu1  ;;  %1304 = vmatpush3.bf16.msra.mxu0 %v346_v22  ;;  %v1699_v26 = vadd.f32 %v1293_v23, %v1114_v3 }
 0x1e7   :  { %v1294_v25 = vpop.f32.mrb[10].mxu1  ;;  %1305 = vmatprep.subr.bf16.mxu0 %v347_v21  ;;  %v1703_v29 = vadd.f32 %v1114_v3, %v297_v24 }
 0x1e8   :  { %v1701_v27 = vadd.f32 %v1294_v25, %v1114_v3  ;;  %v300_v28 = vpop.f32.mrb[11].mxu1 }
 0x1e9   :  { %v1705_v30 = vadd.f32 %v1114_v3, %v300_v28 }
 0x1ea   :  { %v349_v31 = vpack.c.bf16 %v1701_v27, %v1699_v26  ;;  %1306 = vmatpush3.bf16.msra.mxu0 %v347_v21 }
 0x1eb   :  { %v348_v32 = vpack.c.bf16 %v1705_v30, %v1703_v29 }
 0x1ed   :  { %v1297_v33 = vpop.f32.mrb[12].mxu1  ;;  %1307 = vmatprep.subr.bf16.mxu0 %v348_v32 }
 0x1ee   :  { %v313_v34 = vpop.f32.mrb[13].mxu1  ;;  %1308 = vmatpush3.bf16.msra.mxu0 %v348_v32  ;;  %v1711_v36 = vadd.f32 %v1297_v33, %v1114_v3  ;;  %v1802_v33 = vmul.f32 0.1, %v1701_v27 }
 0x1ef   :  { %v1298_v35 = vpop.f32.mrb[14].mxu1  ;;  %1309 = vmatprep.subr.bf16.mxu0 %v349_v31  ;;  %v1715_v39 = vadd.f32 %v1114_v3, %v313_v34 }
 0x1f0   :  { %v1713_v37 = vadd.f32 %v1298_v35, %v1114_v3  ;;  %v316_v38 = vpop.f32.mrb[15].mxu1 }
 0x1f1   :  { %v1717_v40 = vadd.f32 %v1114_v3, %v316_v38  ;;  %v1805_v38 = vmul.f32 0.1, %v1703_v29 }
 0x1f2   :  { %v351_v41 = vpack.c.bf16 %v1713_v37, %v1711_v36  ;;  %1310 = vmatpush3.bf16.msra.mxu0 %v349_v31  ;;  %v1799_v31 = vmul.f32 0.1, %v1699_v26 }
 0x1f3   :  { %v350_v42 = vpack.c.bf16 %v1717_v40, %v1715_v39 }
 0x1f5   :  { %1311 = vmatprep.subr.bf16.mxu0 %v350_v42 }
 0x1f6   :  { %1312 = vmatpush3.bf16.msra.mxu0 %v350_v42 }
 0x1f7   :  { %1313 = vmatprep.subr.bf16.mxu0 %v351_v41 }
 0x1fa   :  { %1314 = vmatpush3.bf16.msra.mxu0 %v351_v41  ;;  %v1808_v41 = vmul.f32 0.1, %v1705_v30 }
 0x1fd   :  { %1316 = vmatmul.mubr.bf16.vlgmr.msra.gmra.mrb[16].mxu0 %v1726_v43 }
 0x1fe   :  { %1319 = vmatprep.mubr.bf16.mxu0 %v1731_v44 }
 0x205   :  { %1320 = vmatmul.mubr.bf16.gmra.mrb[20].mxu0 %v1738_v45 }
 0x206   :  { %1323 = vmatprep.mubr.bf16.mxu0 %v1743_v46 }
 0x20d   :  { %1324 = vmatmul.mubr.bf16.gmra.mrb[24].mxu0 %v1750_v47 }
 0x20e   :  { %1327 = vmatprep.mubr.bf16.mxu0 %v1755_v48 }
 0x215   :  { %1328 = vmatmul.mubr.bf16.gmra.mrb[28].mxu0 %v1762_v49 }
 0x216   :  { %1379 = vmatprep.mubr.bf16.mxu0 %v1668_v1 }
 0x2d0   :  { %v1317_v50 = vpop.f32.mrb[16].mxu0 }
 0x2d1   :  { %v499_v51 = vmul.f32 0.9, %v1317_v50  ;;  %v434_v52 = vpop.f32.mrb[17].mxu0 }
 0x2d2   :  { %v497_v54 = vmul.f32 0.9, %v434_v52  ;;  %v1318_v55 = vpop.f32.mrb[18].mxu0 }
 0x2d3   :  { %v500_v57 = vmul.f32 0.9, %v1318_v55  ;;  %v437_v58 = vpop.f32.mrb[19].mxu0  ;;  %v531_v62 = vadd.f32 %v1767_v53, %v499_v51 }
 0x2d4   :  { %v498_v61 = vmul.f32 0.9, %v437_v58  ;;  %v529_v0 = vadd.f32 %v1773_v59, %v497_v54  ;;  %v1815_v58 = vmul.f32 0.1, %v1711_v36 }
 0x2d5   :  { %v532_v63 = vadd.f32 %v1770_v56, %v500_v57 }
 0x2d6   :  { %v530_v2 = vadd.f32 %v1776_v60, %v498_v61 }
 0x2d7   :  { %v546_v3 = vpack.c.bf16 %v532_v63, %v531_v62  ;;  %v1818_v62 = vmul.f32 0.1, %v1713_v37 }
 0x2d8   :  { %v1321_v4 = vpop.f32.mrb[20].mxu0  ;;  %v545_v5 = vpack.c.bf16 %v530_v2, %v529_v0  ;;  %v1821_v2 = vmul.f32 0.1, %v1715_v39 }
 0x2d9   :  { %v503_v6 = vmul.f32 0.9, %v1321_v4  ;;  %v450_v7 = vpop.f32.mrb[21].mxu0 }
 0x2da   :  { %v501_v9 = vmul.f32 0.9, %v450_v7  ;;  %v1322_v10 = vpop.f32.mrb[22].mxu0  ;;  %1331 = vmatprep.subr.bf16.mxu1 %v545_v5 }
 0x2db   :  { %v504_v12 = vmul.f32 0.9, %v1322_v10  ;;  %v453_v13 = vpop.f32.mrb[23].mxu0  ;;  %1332 = vmatpush3.bf16.msra.mxu1 %v545_v5  ;;  %v535_v16 = vadd.f32 %v1783_v8, %v503_v6 }
 0x2dc   :  { %v502_v18 = vmul.f32 0.9, %v453_v13  ;;  %1333 = vmatprep.subr.bf16.mxu1 %v546_v3  ;;  %v533_v22 = vadd.f32 %v1789_v14, %v501_v9 }
 0x2dd   :  { %v536_v21 = vadd.f32 %v1786_v11, %v504_v12 }
 0x2de   :  { %v534_v17 = vadd.f32 %v1792_v15, %v502_v18 }
 0x2df   :  { %1334 = vmatpush3.bf16.msra.mxu1 %v546_v3  ;;  %v548_v23 = vpack.c.bf16 %v536_v21, %v535_v16  ;;  %v1824_v3 = vmul.f32 0.1, %v1717_v40 }
 0x2e0   :  { %v1325_v24 = vpop.f32.mrb[24].mxu0  ;;  %v547_v25 = vpack.c.bf16 %v534_v17, %v533_v22 }
 0x2e1   :  { %v507_v28 = vmul.f32 0.9, %v1325_v24  ;;  %v466_v19 = vpop.f32.mrb[25].mxu0 }
 0x2e2   :  { %v505_v20 = vmul.f32 0.9, %v466_v19  ;;  %v1326_v32 = vpop.f32.mrb[26].mxu0  ;;  %1335 = vmatprep.subr.bf16.mxu1 %v547_v25 }
 0x2e3   :  { %v508_v34 = vmul.f32 0.9, %v1326_v32  ;;  %v469_v35 = vpop.f32.mrb[27].mxu0  ;;  %1336 = vmatpush3.bf16.msra.mxu1 %v547_v25  ;;  %v539_v26 = vadd.f32 %v1799_v31, %v507_v28 }
 0x2e4   :  { %v506_v42 = vmul.f32 0.9, %v469_v35  ;;  %1337 = vmatprep.subr.bf16.mxu1 %v548_v23  ;;  %v537_v51 = vadd.f32 %v1805_v38, %v505_v20 }
 0x2e5   :  { %v540_v50 = vadd.f32 %v1802_v33, %v508_v34 }
 0x2e6   :  { %v538_v27 = vadd.f32 %v1808_v41, %v506_v42 }
 0x2e7   :  { %1338 = vmatpush3.bf16.msra.mxu1 %v548_v23  ;;  %v550_v52 = vpack.c.bf16 %v540_v50, %v539_v26 }
 0x2e8   :  { %v1329_v54 = vpop.f32.mrb[28].mxu0  ;;  %v549_v55 = vpack.c.bf16 %v538_v27, %v537_v51 }
 0x2e9   :  { %v511_v57 = vmul.f32 0.9, %v1329_v54  ;;  %v482_v29 = vpop.f32.mrb[29].mxu0 }
 0x2ea   :  { %v509_v30 = vmul.f32 0.9, %v482_v29  ;;  %v1330_v61 = vpop.f32.mrb[30].mxu0  ;;  %1339 = vmatprep.subr.bf16.mxu1 %v549_v55 }
 0x2eb   :  { %v512_v63 = vmul.f32 0.9, %v1330_v61  ;;  %v485_v0 = vpop.f32.mrb[31].mxu0  ;;  %1340 = vmatpush3.bf16.msra.mxu1 %v549_v55  ;;  %v543_v36 = vadd.f32 %v1815_v58, %v511_v57 }
 0x2ec   :  { %v510_v4 = vmul.f32 0.9, %v485_v0  ;;  %1341 = vmatprep.subr.bf16.mxu1 %v550_v52  ;;  %v541_v6 = vadd.f32 %v1821_v2, %v509_v30 }
 0x2ed   :  { %v544_v5 = vadd.f32 %v1818_v62, %v512_v63 }
 0x2ee   :  { %v542_v37 = vadd.f32 %v1824_v3, %v510_v4 }
 0x2ef   :  { %1342 = vmatpush3.bf16.msra.mxu1 %v550_v52  ;;  %v552_v7 = vpack.c.bf16 %v544_v5, %v543_v36 }
 0x2f0   :  { %v551_v9 = vpack.c.bf16 %v542_v37, %v541_v6 }
 0x2f2   :  { %1343 = vmatprep.subr.bf16.mxu1 %v551_v9 }
 0x2f3   :  { %1344 = vmatpush3.bf16.msra.mxu1 %v551_v9 }
 0x2f4   :  { %1345 = vmatprep.subr.bf16.mxu1 %v552_v7 }
 0x2f7   :  { %1346 = vmatpush3.bf16.msra.mxu1 %v552_v7 }
 0x2fa   :  { %1348 = vmatmul.mubr.bf16.vlgmr.msra.gmra.mrb[16].mxu1 %v1726_v43 }
 0x2fb   :  { %1351 = vmatprep.mubr.bf16.mxu1 %v1731_v44 }
 0x302   :  { %1352 = vmatmul.mubr.bf16.gmra.mrb[20].mxu1 %v1738_v45 }
 0x303   :  { %1355 = vmatprep.mubr.bf16.mxu1 %v1743_v46 }
 0x30a   :  { %1356 = vmatmul.mubr.bf16.gmra.mrb[24].mxu1 %v1750_v47 }
 0x30b   :  { %1359 = vmatprep.mubr.bf16.mxu1 %v1755_v48 }
 0x312   :  { %1360 = vmatmul.mubr.bf16.gmra.mrb[28].mxu1 %v1762_v49 }
 0x313   :  { %1411 = vmatprep.mubr.bf16.mxu1 %v1668_v1 }
 0x3cd   :  { %v1349_v39 = vpop.f32.mrb[16].mxu1 }
 0x3ce   :  { %v652_v40 = vmul.f32 0.9, %v1349_v39  ;;  %v587_v10 = vpop.f32.mrb[17].mxu1 }
 0x3cf   :  { %v650_v12 = vmul.f32 0.9, %v587_v10  ;;  %v1350_v13 = vpop.f32.mrb[18].mxu1 }
 0x3d0   :  { %v653_v18 = vmul.f32 0.9, %v1350_v13  ;;  %v590_v16 = vpop.f32.mrb[19].mxu1  ;;  %v668_v22 = vadd.f32 %v652_v40, %v1767_v53 }
 0x3d1   :  { %v651_v21 = vmul.f32 0.9, %v590_v16  ;;  %v666_v23 = vadd.f32 %v650_v12, %v1773_v59 }
 0x3d2   :  { %v669_v17 = vadd.f32 %v653_v18, %v1770_v56 }
 0x3d3   :  { %v667_v24 = vadd.f32 %v651_v21, %v1776_v60 }
 0x3d4   :  { %v683_v25 = vpack.c.bf16 %v669_v17, %v668_v22 }
 0x3d5   :  { %v1353_v28 = vpop.f32.mrb[20].mxu1  ;;  %v682_v19 = vpack.c.bf16 %v667_v24, %v666_v23 }
 0x3d6   :  { %v656_v20 = vmul.f32 0.9, %v1353_v28  ;;  %v603_v32 = vpop.f32.mrb[21].mxu1 }
 0x3d7   :  { %v654_v34 = vmul.f32 0.9, %v603_v32  ;;  %v1354_v35 = vpop.f32.mrb[22].mxu1  ;;  %1363 = vmatprep.subr.bf16.mxu0 %v682_v19 }
 0x3d8   :  { %v657_v42 = vmul.f32 0.9, %v1354_v35  ;;  %v606_v26 = vpop.f32.mrb[23].mxu1  ;;  %1364 = vmatpush3.bf16.msra.mxu0 %v682_v19  ;;  %v672_v51 = vadd.f32 %v656_v20, %v1783_v8 }
 0x3d9   :  { %v655_v50 = vmul.f32 0.9, %v606_v26  ;;  %1365 = vmatprep.subr.bf16.mxu0 %v683_v25  ;;  %v670_v52 = vadd.f32 %v654_v34, %v1789_v14 }
 0x3da   :  { %v673_v27 = vadd.f32 %v657_v42, %v1786_v11 }
 0x3db   :  { %v671_v54 = vadd.f32 %v655_v50, %v1792_v15 }
 0x3dc   :  { %1366 = vmatpush3.bf16.msra.mxu0 %v683_v25  ;;  %v685_v55 = vpack.c.bf16 %v673_v27, %v672_v51 }
 0x3dd   :  { %v1357_v57 = vpop.f32.mrb[24].mxu1  ;;  %v684_v29 = vpack.c.bf16 %v671_v54, %v670_v52 }
 0x3de   :  { %v660_v30 = vmul.f32 0.9, %v1357_v57  ;;  %v619_v61 = vpop.f32.mrb[25].mxu1 }
 0x3df   :  { %v658_v63 = vmul.f32 0.9, %v619_v61  ;;  %v1358_v0 = vpop.f32.mrb[26].mxu1  ;;  %1367 = vmatprep.subr.bf16.mxu0 %v684_v29 }
 0x3e0   :  { %v661_v4 = vmul.f32 0.9, %v1358_v0  ;;  %v622_v36 = vpop.f32.mrb[27].mxu1  ;;  %1368 = vmatpush3.bf16.msra.mxu0 %v684_v29  ;;  %v676_v6 = vadd.f32 %v660_v30, %v1799_v31 }
 0x3e1   :  { %v659_v5 = vmul.f32 0.9, %v622_v36  ;;  %1369 = vmatprep.subr.bf16.mxu0 %v685_v55  ;;  %v674_v7 = vadd.f32 %v658_v63, %v1805_v38 }
 0x3e2   :  { %v677_v37 = vadd.f32 %v661_v4, %v1802_v33 }
 0x3e3   :  { %v675_v9 = vadd.f32 %v659_v5, %v1808_v41 }
 0x3e4   :  { %1370 = vmatpush3.bf16.msra.mxu0 %v685_v55  ;;  %v687_v39 = vpack.c.bf16 %v677_v37, %v676_v6 }
 0x3e5   :  { %v1361_v40 = vpop.f32.mrb[28].mxu1  ;;  %v686_v10 = vpack.c.bf16 %v675_v9, %v674_v7 }
 0x3e6   :  { %v664_v12 = vmul.f32 0.9, %v1361_v40  ;;  %v635_v13 = vpop.f32.mrb[29].mxu1 }
 0x3e7   :  { %v662_v18 = vmul.f32 0.9, %v635_v13  ;;  %v1362_v16 = vpop.f32.mrb[30].mxu1  ;;  %1371 = vmatprep.subr.bf16.mxu0 %v686_v10 }
 0x3e8   :  { %v665_v21 = vmul.f32 0.9, %v1362_v16  ;;  %v638_v22 = vpop.f32.mrb[31].mxu1  ;;  %1372 = vmatpush3.bf16.msra.mxu0 %v686_v10  ;;  %v680_v23 = vadd.f32 %v664_v12, %v1815_v58 }
 0x3e9   :  { %v663_v17 = vmul.f32 0.9, %v638_v22  ;;  %1373 = vmatprep.subr.bf16.mxu0 %v687_v39  ;;  %v678_v25 = vadd.f32 %v662_v18, %v1821_v2 }
 0x3ea   :  { %v681_v24 = vadd.f32 %v665_v21, %v1818_v62 }
 0x3eb   :  { %v679_v28 = vadd.f32 %v663_v17, %v1824_v3 }
 0x3ec   :  { %1374 = vmatpush3.bf16.msra.mxu0 %v687_v39  ;;  %v689_v19 = vpack.c.bf16 %v681_v24, %v680_v23 }
 0x3ed   :  { %v688_v20 = vpack.c.bf16 %v679_v28, %v678_v25 }
 0x3ef   :  { %1375 = vmatprep.subr.bf16.mxu0 %v688_v20 }
 0x3f0   :  { %1376 = vmatpush3.bf16.msra.mxu0 %v688_v20 }
 0x3f1   :  { %1377 = vmatprep.subr.bf16.mxu0 %v689_v19 }
 0x3f4   :  { %1378 = vmatpush3.bf16.msra.mxu0 %v689_v19 }
 0x3f7   :  { %1380 = vmatmul.mubr.bf16.vlgmr.msra.gmra.mrb[32].mxu0 %v1726_v43 }
 0x3f8   :  { %1383 = vmatprep.mubr.bf16.mxu0 %v1731_v44 }
 0x3ff   :  { %1384 = vmatmul.mubr.bf16.gmra.mrb[36].mxu0 %v1738_v45 }
 0x400   :  { %1387 = vmatprep.mubr.bf16.mxu0 %v1743_v46 }
 0x407   :  { %1388 = vmatmul.mubr.bf16.gmra.mrb[40].mxu0 %v1750_v47 }
 0x408   :  { %1391 = vmatprep.mubr.bf16.mxu0 %v1755_v48 }
 0x40f   :  { %1392 = vmatmul.mubr.bf16.gmra.mrb[44].mxu0 %v1762_v49 }
 0x410   :  { %1443 = vmatprep.mubr.bf16.mxu0 %v1668_v1 }
 0x4ca   :  { %v1381_v32 = vpop.f32.mrb[32].mxu0 }
 0x4cb   :  { %v789_v34 = vmul.f32 0.9, %v1381_v32  ;;  %v724_v35 = vpop.f32.mrb[33].mxu0 }
 0x4cc   :  { %v787_v42 = vmul.f32 0.9, %v724_v35  ;;  %v1382_v26 = vpop.f32.mrb[34].mxu0 }
 0x4cd   :  { %v790_v50 = vmul.f32 0.9, %v1382_v26  ;;  %v727_v51 = vpop.f32.mrb[35].mxu0  ;;  %v805_v52 = vadd.f32 %v789_v34, %v1767_v53 }
 0x4ce   :  { %v788_v27 = vmul.f32 0.9, %v727_v51  ;;  %v803_v55 = vadd.f32 %v787_v42, %v1773_v59 }
 0x4cf   :  { %v806_v54 = vadd.f32 %v790_v50, %v1770_v56 }
 0x4d0   :  { %v804_v57 = vadd.f32 %v788_v27, %v1776_v60 }
 0x4d1   :  { %v820_v29 = vpack.c.bf16 %v806_v54, %v805_v52 }
 0x4d2   :  { %v1385_v30 = vpop.f32.mrb[36].mxu0  ;;  %v819_v61 = vpack.c.bf16 %v804_v57, %v803_v55 }
 0x4d3   :  { %v793_v1 = vmul.f32 0.9, %v1385_v30  ;;  %v740_v63 = vpop.f32.mrb[37].mxu0 }
 0x4d4   :  { %v791_v0 = vmul.f32 0.9, %v740_v63  ;;  %v1386_v4 = vpop.f32.mrb[38].mxu0  ;;  %1395 = vmatprep.subr.bf16.mxu1 %v819_v61 }
 0x4d5   :  { %v794_v36 = vmul.f32 0.9, %v1386_v4  ;;  %v743_v5 = vpop.f32.mrb[39].mxu0  ;;  %1396 = vmatpush3.bf16.msra.mxu1 %v819_v61  ;;  %v809_v37 = vadd.f32 %v793_v1, %v1783_v8 }
 0x4d6   :  { %v792_v6 = vmul.f32 0.9, %v743_v5  ;;  %1397 = vmatprep.subr.bf16.mxu1 %v820_v29  ;;  %v807_v9 = vadd.f32 %v791_v0, %v1789_v14 }
 0x4d7   :  { %v810_v7 = vadd.f32 %v794_v36, %v1786_v11 }
 0x4d8   :  { %v808_v39 = vadd.f32 %v792_v6, %v1792_v15 }
 0x4d9   :  { %1398 = vmatpush3.bf16.msra.mxu1 %v820_v29  ;;  %v822_v40 = vpack.c.bf16 %v810_v7, %v809_v37 }
 0x4da   :  { %v1389_v10 = vpop.f32.mrb[40].mxu0  ;;  %v821_v12 = vpack.c.bf16 %v808_v39, %v807_v9 }
 0x4db   :  { %v797_v13 = vmul.f32 0.9, %v1389_v10  ;;  %v756_v18 = vpop.f32.mrb[41].mxu0 }
 0x4dc   :  { %v795_v16 = vmul.f32 0.9, %v756_v18  ;;  %v1390_v21 = vpop.f32.mrb[42].mxu0  ;;  %1399 = vmatprep.subr.bf16.mxu1 %v821_v12 }
 0x4dd   :  { %v798_v22 = vmul.f32 0.9, %v1390_v21  ;;  %v759_v17 = vpop.f32.mrb[43].mxu0  ;;  %1400 = vmatpush3.bf16.msra.mxu1 %v821_v12  ;;  %v813_v24 = vadd.f32 %v797_v13, %v1799_v31 }
 0x4de   :  { %v796_v23 = vmul.f32 0.9, %v759_v17  ;;  %1401 = vmatprep.subr.bf16.mxu1 %v822_v40  ;;  %v811_v28 = vadd.f32 %v795_v16, %v1805_v38 }
 0x4df   :  { %v814_v25 = vadd.f32 %v798_v22, %v1802_v33 }
 0x4e0   :  { %v812_v19 = vadd.f32 %v796_v23, %v1808_v41 }
 0x4e1   :  { %1402 = vmatpush3.bf16.msra.mxu1 %v822_v40  ;;  %v824_v20 = vpack.c.bf16 %v814_v25, %v813_v24 }
 0x4e2   :  { %v1393_v32 = vpop.f32.mrb[44].mxu0  ;;  %v823_v34 = vpack.c.bf16 %v812_v19, %v811_v28 }
 0x4e3   :  { %v801_v35 = vmul.f32 0.9, %v1393_v32  ;;  %v772_v42 = vpop.f32.mrb[45].mxu0 }
 0x4e4   :  { %v799_v26 = vmul.f32 0.9, %v772_v42  ;;  %v1394_v50 = vpop.f32.mrb[46].mxu0  ;;  %1403 = vmatprep.subr.bf16.mxu1 %v823_v34 }
 0x4e5   :  { %v802_v51 = vmul.f32 0.9, %v1394_v50  ;;  %v775_v27 = vpop.f32.mrb[47].mxu0  ;;  %1404 = vmatpush3.bf16.msra.mxu1 %v823_v34  ;;  %v817_v54 = vadd.f32 %v801_v35, %v1815_v58 }
 0x4e6   :  { %v800_v52 = vmul.f32 0.9, %v775_v27  ;;  %1405 = vmatprep.subr.bf16.mxu1 %v824_v20  ;;  %v815_v57 = vadd.f32 %v799_v26, %v1821_v2 }
 0x4e7   :  { %v818_v55 = vadd.f32 %v802_v51, %v1818_v62 }
 0x4e8   :  { %v816_v29 = vadd.f32 %v800_v52, %v1824_v3 }
 0x4e9   :  { %1406 = vmatpush3.bf16.msra.mxu1 %v824_v20  ;;  %v826_v30 = vpack.c.bf16 %v818_v55, %v817_v54 }
 0x4ea   :  { %v825_v61 = vpack.c.bf16 %v816_v29, %v815_v57 }
 0x4ec   :  { %1407 = vmatprep.subr.bf16.mxu1 %v825_v61 }
 0x4ed   :  { %1408 = vmatpush3.bf16.msra.mxu1 %v825_v61 }
 0x4ee   :  { %1409 = vmatprep.subr.bf16.mxu1 %v826_v30 }
 0x4f1   :  { %1410 = vmatpush3.bf16.msra.mxu1 %v826_v30 }
 0x4f4   :  { %1412 = vmatmul.mubr.bf16.vlgmr.msra.gmra.mrb[32].mxu1 %v1726_v43 }
 0x4f5   :  { %1415 = vmatprep.mubr.bf16.mxu1 %v1731_v44 }
 0x4fc   :  { %1416 = vmatmul.mubr.bf16.gmra.mrb[36].mxu1 %v1738_v45 }
 0x4fd   :  { %1419 = vmatprep.mubr.bf16.mxu1 %v1743_v46 }
 0x504   :  { %1420 = vmatmul.mubr.bf16.gmra.mrb[40].mxu1 %v1750_v47 }
 0x505   :  { %1423 = vmatprep.mubr.bf16.mxu1 %v1755_v48 }
 0x50c   :  { %1424 = vmatmul.mubr.bf16.gmra.mrb[44].mxu1 %v1762_v49 }
 0x50d   :  { %1451 = vmatprep.mubr.bf16.mxu1 %v1743_v46 }
 0x5c7   :  { %v1413_v1 = vpop.f32.mrb[32].mxu1 }
 0x5c8   :  { %v926_v63 = vmul.f32 0.9, %v1413_v1  ;;  %v861_v0 = vpop.f32.mrb[33].mxu1 }
 0x5c9   :  { %v924_v4 = vmul.f32 0.9, %v861_v0  ;;  %v1414_v36 = vpop.f32.mrb[34].mxu1 }
 0x5ca   :  { %v927_v5 = vmul.f32 0.9, %v1414_v36  ;;  %v864_v6 = vpop.f32.mrb[35].mxu1  ;;  %v942_v7 = vadd.f32 %v926_v63, %v1767_v53 }
 0x5cb   :  { %v925_v37 = vmul.f32 0.9, %v864_v6  ;;  %v940_v39 = vadd.f32 %v924_v4, %v1773_v59 }
 0x5cc   :  { %v943_v9 = vadd.f32 %v927_v5, %v1770_v56 }
 0x5cd   :  { %v941_v40 = vadd.f32 %v925_v37, %v1776_v60 }
 0x5ce   :  { %v957_v10 = vpack.c.bf16 %v943_v9, %v942_v7 }
 0x5cf   :  { %v956_v12 = vpack.c.bf16 %v941_v40, %v940_v39  ;;  %v1417_v13 = vpop.f32.mrb[36].mxu1 }
 0x5d0   :  { %v930_v46 = vmul.f32 0.9, %v1417_v13  ;;  %v877_v18 = vpop.f32.mrb[37].mxu1 }
 0x5d1   :  { %v928_v16 = vmul.f32 0.9, %v877_v18  ;;  %v1418_v21 = vpop.f32.mrb[38].mxu1  ;;  %1427 = vmatprep.subr.bf16.mxu0 %v956_v12  ;;  %1459 = vmatprep.subr.bf16.mxu1 %v956_v12 }
 0x5d2   :  { %v931_v22 = vmul.f32 0.9, %v1418_v21  ;;  %v880_v17 = vpop.f32.mrb[39].mxu1  ;;  %1428 = vmatpush3.bf16.msra.mxu0 %v956_v12  ;;  %1467 = vmatpush3.bf16.msra.mxu1 %v956_v12  ;;  %v946_v24 = vadd.f32 %v930_v46, %v1783_v8 }
 0x5d3   :  { %v929_v23 = vmul.f32 0.9, %v880_v17  ;;  %1429 = vmatprep.subr.bf16.mxu0 %v957_v10  ;;  %1460 = vmatprep.subr.bf16.mxu1 %v957_v10  ;;  %v944_v28 = vadd.f32 %v928_v16, %v1789_v14 }
 0x5d4   :  { %v947_v25 = vadd.f32 %v931_v22, %v1786_v11 }
 0x5d5   :  { %v945_v19 = vadd.f32 %v929_v23, %v1792_v15 }
 0x5d6   :  { %v959_v20 = vpack.c.bf16 %v947_v25, %v946_v24  ;;  %1430 = vmatpush3.bf16.msra.mxu0 %v957_v10  ;;  %1468 = vmatpush3.bf16.msra.mxu1 %v957_v10 }
 0x5d7   :  { %v958_v32 = vpack.c.bf16 %v945_v19, %v944_v28  ;;  %v1421_v34 = vpop.f32.mrb[40].mxu1 }
 0x5d8   :  { %v934_v35 = vmul.f32 0.9, %v1421_v34  ;;  %v893_v42 = vpop.f32.mrb[41].mxu1 }
 0x5d9   :  { %v932_v26 = vmul.f32 0.9, %v893_v42  ;;  %v1422_v50 = vpop.f32.mrb[42].mxu1  ;;  %1431 = vmatprep.subr.bf16.mxu0 %v958_v32  ;;  %1461 = vmatprep.subr.bf16.mxu1 %v958_v32 }
 0x5da   :  { %v935_v51 = vmul.f32 0.9, %v1422_v50  ;;  %v896_v27 = vpop.f32.mrb[43].mxu1  ;;  %1432 = vmatpush3.bf16.msra.mxu0 %v958_v32  ;;  %1469 = vmatpush3.bf16.msra.mxu1 %v958_v32  ;;  %v950_v54 = vadd.f32 %v934_v35, %v1799_v31 }
 0x5db   :  { %v933_v52 = vmul.f32 0.9, %v896_v27  ;;  %1433 = vmatprep.subr.bf16.mxu0 %v959_v20  ;;  %1462 = vmatprep.subr.bf16.mxu1 %v959_v20  ;;  %v948_v57 = vadd.f32 %v932_v26, %v1805_v38 }
 0x5dc   :  { %v951_v55 = vadd.f32 %v935_v51, %v1802_v33 }
 0x5dd   :  { %v949_v29 = vadd.f32 %v933_v52, %v1808_v41 }
 0x5de   :  { %v961_v30 = vpack.c.bf16 %v951_v55, %v950_v54  ;;  %1434 = vmatpush3.bf16.msra.mxu0 %v959_v20  ;;  %1470 = vmatpush3.bf16.msra.mxu1 %v959_v20 }
 0x5df   :  { %v960_v61 = vpack.c.bf16 %v949_v29, %v948_v57  ;;  %v1425_v1 = vpop.f32.mrb[44].mxu1 }
 0x5e0   :  { %v938_v63 = vmul.f32 0.9, %v1425_v1  ;;  %v909_v0 = vpop.f32.mrb[45].mxu1 }
 0x5e1   :  { %v936_v4 = vmul.f32 0.9, %v909_v0  ;;  %v1426_v36 = vpop.f32.mrb[46].mxu1  ;;  %1435 = vmatprep.subr.bf16.mxu0 %v960_v61  ;;  %1463 = vmatprep.subr.bf16.mxu1 %v960_v61 }
 0x5e2   :  { %v939_v5 = vmul.f32 0.9, %v1426_v36  ;;  %v912_v6 = vpop.f32.mrb[47].mxu1  ;;  %1436 = vmatpush3.bf16.msra.mxu0 %v960_v61  ;;  %1471 = vmatpush3.bf16.msra.mxu1 %v960_v61  ;;  %v954_v7 = vadd.f32 %v938_v63, %v1815_v58 }
 0x5e3   :  { %v937_v37 = vmul.f32 0.9, %v912_v6  ;;  %1437 = vmatprep.subr.bf16.mxu0 %v961_v30  ;;  %1464 = vmatprep.subr.bf16.mxu1 %v961_v30  ;;  %v952_v39 = vadd.f32 %v936_v4, %v1821_v2 }
 0x5e4   :  { %v955_v9 = vadd.f32 %v939_v5, %v1818_v62 }
 0x5e5   :  { %v953_v40 = vadd.f32 %v937_v37, %v1824_v3 }
 0x5e6   :  { %v963_v10 = vpack.c.bf16 %v955_v9, %v954_v7  ;;  %1438 = vmatpush3.bf16.msra.mxu0 %v961_v30  ;;  %1472 = vmatpush3.bf16.msra.mxu1 %v961_v30 }
 0x5e7   :  { %v962_v12 = vpack.c.bf16 %v953_v40, %v952_v39 }
 0x5e9   :  { %1439 = vmatprep.subr.bf16.mxu0 %v962_v12  ;;  %1465 = vmatprep.subr.bf16.mxu1 %v962_v12 }
 0x5ea   :  { %1440 = vmatpush3.bf16.msra.mxu0 %v962_v12  ;;  %1473 = vmatpush3.bf16.msra.mxu1 %v962_v12 }
 0x5eb   :  { %1441 = vmatprep.subr.bf16.mxu0 %v963_v10  ;;  %1466 = vmatprep.subr.bf16.mxu1 %v963_v10 }
 0x5ee   :  { %1442 = vmatpush3.bf16.msra.mxu0 %v963_v10  ;;  %1474 = vmatpush3.bf16.msra.mxu1 %v963_v10 }
 0x5f1   :  { %1444 = vmatmul.mubr.bf16.vlgmr.msra.gmra.mrb[48].mxu0 %v1726_v43  ;;  %1452 = vmatmul.mubr.bf16.vlgmr.msra.gmra.mrb[48].mxu1 %v1750_v47 }
 0x5f2   :  { %1447 = vmatprep.mubr.bf16.mxu0 %v1731_v44  ;;  %1455 = vmatprep.mubr.bf16.mxu1 %v1755_v48 }
 0x5f9   :  { %1448 = vmatmul.mubr.bf16.gmra.mrb[52].mxu0 %v1738_v45  ;;  %1456 = vmatmul.mubr.bf16.gmra.mrb[52].mxu1 %v1762_v49 }
 0x6c4   :  { %v1445_v13 = vpop.f32.mrb[48].mxu0  ;;  %v1453_v46 = vpop.f32.mrb[48].mxu1 }
 0x6c5   :  { %v1063_v18 = vmul.f32 0.9, %v1445_v13  ;;  %v1071_v16 = vmul.f32 0.9, %v1453_v46  ;;  %v998_v21 = vpop.f32.mrb[49].mxu0  ;;  %v1030_v22 = vpop.f32.mrb[49].mxu1 }
 0x6c6   :  { %v1061_v17 = vmul.f32 0.9, %v998_v21  ;;  %v1069_v23 = vmul.f32 0.9, %v1030_v22  ;;  %v1446_v24 = vpop.f32.mrb[50].mxu0  ;;  %v1454_v43 = vpop.f32.mrb[50].mxu1 }
 0x6c7   :  { %v1079_v47 = vadd.f32 %v1063_v18, %v1767_v53  ;;  %v1087_v44 = vadd.f32 %v1071_v16, %v1799_v31  ;;  %v1064_v25 = vmul.f32 0.9, %v1446_v24  ;;  %v1072_v48 = vmul.f32 0.9, %v1454_v43  ;;  %v1001_v28 = vpop.f32.mrb[51].mxu0  ;;  %v1033_v45 = vpop.f32.mrb[51].mxu1 }
 0x6c8   :  { %v1077_v49 = vadd.f32 %v1061_v17, %v1773_v59  ;;  %v1085_v19 = vadd.f32 %v1069_v23, %v1805_v38  ;;  %v1062_v20 = vmul.f32 0.9, %v1001_v28  ;;  %v1070_v32 = vmul.f32 0.9, %v1033_v45 }
 0x6c9   :  { %1095 = vst [vmem:[%s1978_s6 + $0x10] sm:$0xff] %v1079_v47  ;;  %1103 = vst [vmem:[%s1978_s6 + $0x50] sm:$0xff] %v1087_v44  ;;  %v1080_v53 = vadd.f32 %v1064_v25, %v1770_v56  ;;  %v1088_v31 = vadd.f32 %v1072_v48, %v1802_v33 }
 0x6ca   :  { %1093 = vst [vmem:[%s1978_s6] sm:$0xff] %v1077_v49  ;;  %1101 = vst [vmem:[%s1978_s6 + $0x40] sm:$0xff] %v1085_v19  ;;  %v1078_v59 = vadd.f32 %v1062_v20, %v1776_v60  ;;  %v1086_v38 = vadd.f32 %v1070_v32, %v1808_v41 }
 0x6cb   :  { %1096 = vst [vmem:[%s1978_s6 + $0x18] sm:$0xff] %v1080_v53  ;;  %1104 = vst [vmem:[%s1978_s6 + $0x58] sm:$0xff] %v1088_v31 }
 0x6cc   :  { %1094 = vst [vmem:[%s1978_s6 + $0x8] sm:$0xff] %v1078_v59  ;;  %1102 = vst [vmem:[%s1978_s6 + $0x48] sm:$0xff] %v1086_v38  ;;  %v1449_v56 = vpop.f32.mrb[52].mxu0  ;;  %v1457_v60 = vpop.f32.mrb[52].mxu1 }
 0x6cd   :  { %v1067_v33 = vmul.f32 0.9, %v1449_v56  ;;  %v1075_v41 = vmul.f32 0.9, %v1457_v60  ;;  %v1014_v34 = vpop.f32.mrb[53].mxu0  ;;  %v1046_v35 = vpop.f32.mrb[53].mxu1 }
 0x6ce   :  { %v1065_v42 = vmul.f32 0.9, %v1014_v34  ;;  %v1073_v26 = vmul.f32 0.9, %v1046_v35  ;;  %v1450_v50 = vpop.f32.mrb[54].mxu0  ;;  %v1458_v51 = vpop.f32.mrb[54].mxu1 }
 0x6cf   :  { %v1083_v27 = vadd.f32 %v1067_v33, %v1783_v8  ;;  %v1091_v52 = vadd.f32 %v1075_v41, %v1815_v58  ;;  %v1068_v54 = vmul.f32 0.9, %v1450_v50  ;;  %v1076_v55 = vmul.f32 0.9, %v1458_v51  ;;  %v1017_v57 = vpop.f32.mrb[55].mxu0  ;;  %v1049_v29 = vpop.f32.mrb[55].mxu1 }
 0x6d0   :  { %v1081_v30 = vadd.f32 %v1065_v42, %v1789_v14  ;;  %v1089_v61 = vadd.f32 %v1073_v26, %v1821_v2  ;;  %v1066_v1 = vmul.f32 0.9, %v1017_v57  ;;  %v1074_v63 = vmul.f32 0.9, %v1049_v29 }
 0x6d1   :  { %1099 = vst [vmem:[%s1978_s6 + $0x30] sm:$0xff] %v1083_v27  ;;  %1107 = vst [vmem:[%s1978_s6 + $0x70] sm:$0xff] %v1091_v52  ;;  %v1084_v8 = vadd.f32 %v1068_v54, %v1786_v11  ;;  %v1092_v58 = vadd.f32 %v1076_v55, %v1818_v62 }
 0x6d2   :  { %1097 = vst [vmem:[%s1978_s6 + $0x20] sm:$0xff] %v1081_v30  ;;  %1105 = vst [vmem:[%s1978_s6 + $0x60] sm:$0xff] %v1089_v61  ;;  %v1082_v14 = vadd.f32 %v1066_v1, %v1792_v15  ;;  %v1090_v2 = vadd.f32 %v1074_v63, %v1824_v3 }
 0x6d3   :  { %1100 = vst [vmem:[%s1978_s6 + $0x38] sm:$0xff] %v1084_v8  ;;  %1108 = vst [vmem:[%s1978_s6 + $0x78] sm:$0xff] %v1092_v58 }
 0x6d4   :  { %1098 = vst [vmem:[%s1978_s6 + $0x28] sm:$0xff] %v1082_v14  ;;  %1106 = vst [vmem:[%s1978_s6 + $0x68] sm:$0xff] %v1090_v2 }

</bundles_post_ra>
